<compile_context>
chip_gen: v6e
topology: v6e:2x2x1
jax: 0.10.0
libtpu: 0.0.40
codegen_flags: <defaults>
</compile_context>

<pallas_src>
import functools

import numpy as np
import jax
import jax.numpy as jnp
from jax.experimental import pallas as pl
from jax.experimental.pallas import tpu as pltpu


def _nearest_idx(out_size, in_size):
    """PyTorch mode='nearest' source indices: floor(i * in / out)."""
    i = np.arange(out_size)
    return np.minimum((i * in_size) // out_size, in_size - 1).astype(np.int32)


def _one_hot_selector(idx, in_size, out_size):
    m = np.zeros((in_size, out_size), dtype=np.float32)
    m[idx, np.arange(out_size)] = 1.0
    return m


def _round_up(n, m):
    return ((n + m - 1) // m) * m


def _unpool_kernel_full(x_ref, m_ref, o_ref, *, fv, s_out):
    # x_ref: (T, S_in)         input rows (one row per (b, fin, v))
    # m_ref: (S_in, S_out)     one-hot (X,Y,Z)->(Xo,Yo,Zo) nearest selector
    # o_ref: (T, fv*S_out)     fv = kernel_size_sph (V replication factor)
    row = jnp.dot(x_ref[...], m_ref[...],
                  preferred_element_type=jnp.float32).astype(o_ref.dtype)
    # V-axis x fv expansion: same lane-dense row stored at fv lane offsets
    # (each offset is a static multiple of S_out, itself a multiple of 128 at
    # realistic sizes -> full unmasked vector stores).
    for a in range(fv):
        o_ref[:, pl.ds(a * s_out, s_out)] = row


def _unpool_kernel_per_x(x_ref, myz_ref, o_ref, *, fv, s_out, yz, yzo,
                         x_size, x_src):
    # Fallback when the combined (S_in, S_out) selector would be too large:
    # per-input-x (Y,Z) selection, stored directly into the output lane slices
    # (no concatenate temporary).
    myz = myz_ref[...]
    for x in range(x_size):
        up = jnp.dot(x_ref[:, pl.ds(x * yz, yz)], myz,
                     preferred_element_type=jnp.float32).astype(o_ref.dtype)
        for xo, src in enumerate(x_src):
            if src != x:
                continue
            for a in range(fv):
                o_ref[:, pl.ds(a * s_out + xo * yzo, yzo)] = up


def mixed_pooling_avg_unpool(x, indices_spa=None, indices_sph=None,
                             kernel_size_spa=(2, 2, 2), stride=None,
                             kernel_size_sph=4):
    """Pallas implementation of MixedPoolingAvgUnpool.forward."""
    del indices_spa, indices_sph  # unused by the reference forward as well
    if stride is None:
        stride = kernel_size_spa
    if isinstance(stride, int):
        stride = (stride, stride, stride)
    if isinstance(kernel_size_spa, int):
        kernel_size_spa = (kernel_size_spa,) * 3

    B, Fin, V, X, Y, Z = x.shape
    fv = int(kernel_size_sph)
    Vo = V * fv
    Xo = (X - 1) * stride[0] + kernel_size_spa[0]
    Yo = (Y - 1) * stride[1] + kernel_size_spa[1]
    Zo = (Z - 1) * stride[2] + kernel_size_spa[2]

    # Static nearest-neighbour source maps (match F.interpolate 'nearest').
    ix = _nearest_idx(Xo, X)
    iy = _nearest_idx(Yo, Y)
    iz = _nearest_idx(Zo, Z)

    # Selection-by-matmul is exact only for floating inputs; keep integer inputs
    # on a plain gather path (identical forward semantics, no Pallas needed).
    if not jnp.issubdtype(x.dtype, jnp.floating):
        out = jnp.repeat(x, fv, axis=2)
        out = jnp.take(out, jnp.asarray(ix), axis=3)
        out = jnp.take(out, jnp.asarray(iy), axis=4)
        out = jnp.take(out, jnp.asarray(iz), axis=5)
        return out

    S_in = X * Y * Z
    YZ, YZo = Y * Z, Yo * Zo
    S_out = Xo * YZo
    itemsize = jnp.dtype(x.dtype).itemsize

    # Combined one-hot selector (X*Y*Z, Xo*Yo*Zo); fall back to the per-x path
    # only when it would be too large for VMEM.
    full_sel_bytes = S_in * S_out * itemsize
    use_full = full_sel_bytes <= (4 << 20)
    if use_full:
        sel_np = np.kron(_one_hot_selector(ix, X, Xo),
                         np.kron(_one_hot_selector(iy, Y, Yo),
                                 _one_hot_selector(iz, Z, Zo)))
        sel_shape = (S_in, S_out)
        kernel = functools.partial(_unpool_kernel_full, fv=fv, s_out=S_out)
    else:
        sel_np = np.kron(_one_hot_selector(iy, Y, Yo),
                         _one_hot_selector(iz, Z, Zo))
        sel_shape = (YZ, YZo)
        kernel = functools.partial(_unpool_kernel_per_x, fv=fv, s_out=S_out,
                                   yz=YZ, yzo=YZo, x_size=X,
                                   x_src=tuple(int(s) for s in ix))
    sel = jnp.asarray(sel_np, dtype=x.dtype)
    sel_bytes = sel_shape[0] * sel_shape[1] * itemsize

    BFV = B * Fin * V
    x2 = x.reshape(BFV, S_in)            # pure (metadata) reshape

    # ---- Tile sizing: per-generation VMEM budget. --------------------------
    try:
        vmem_cap = int(pltpu.get_tpu_info().vmem_capacity_bytes)
    except Exception:                     # pragma: no cover - conservative default
        vmem_cap = 64 << 20               # v7x per-TensorCore VMEM
    # VMEM per output row: double-buffered output + input blocks + f32 matmul
    # temporary.  The op is HBM-write bound, so spend roughly a third of VMEM.
    per_row = 2 * fv * S_out * itemsize + 2 * S_in * itemsize + 2 * S_out * 4
    budget = min(vmem_cap // 3, 40 << 20)
    t_vmem = max(8, (budget - sel_bytes) // per_row)
    # Keep several grid steps so both v7x TensorCores get work and the output
    # write-back DMA always overlaps with the next block's compute.
    min_steps = 8
    t_steps = max(8, _round_up(pl.cdiv(BFV, min_steps), 8))
    T = max(8, (min(t_vmem, t_steps) // 8) * 8)
    T = min(T, _round_up(BFV, 8))

    BFV_pad = _round_up(BFV, T)
    if BFV_pad != BFV:
        x2 = jnp.pad(x2, ((0, BFV_pad - BFV), (0, 0)))
    n_steps = BFV_pad // T

    in_bytes = BFV_pad * S_in * itemsize + sel_bytes
    out_bytes = BFV_pad * fv * S_out * itemsize
    cost = pl.CostEstimate(flops=2 * BFV_pad * S_in * S_out,
                           transcendentals=0,
                           bytes_accessed=in_bytes + out_bytes)

    needed_vmem = sel_bytes + T * per_row + (2 << 20)
    vmem_limit = int(min(vmem_cap * 3 // 4, max(needed_vmem, 32 << 20)))
    vmem_limit = min(max(vmem_limit, needed_vmem), vmem_cap)

    out2 = pl.pallas_call(
        kernel,
        out_shape=jax.ShapeDtypeStruct((BFV_pad, fv * S_out), x.dtype),
        grid_spec=pltpu.PrefetchScalarGridSpec(
            num_scalar_prefetch=0,
            grid=(n_steps,),
            in_specs=[
                pl.BlockSpec((T, S_in), lambda r: (r, 0)),
                # Small constant selector; index_map is constant across the grid.
                pl.BlockSpec(sel_shape, lambda r: (0, 0)),
            ],
            out_specs=pl.BlockSpec((T, fv * S_out), lambda r: (r, 0)),
        ),
        compiler_params=pltpu.CompilerParams(
            dimension_semantics=("parallel",),
            vmem_limit_bytes=vmem_limit),
        cost_estimate=cost,
    )(x2, sel)

    if BFV_pad != BFV:
        out2 = out2[:BFV]
    # (BFV, fv*Xo*Yo*Zo) -> (B, Fin, Vo, Xo, Yo, Zo) is a pure reshape: the fv
    # factor sits right after V and the lane axis is (Xo, Yo, Zo) in order.
    # TODO(synk): optional v7x refinement - replicate fv via async HBM copies from
    # a single VMEM row instead of fv VMEM stores (cuts in-core store traffic).
    return out2.reshape(B, Fin, Vo, Xo, Yo, Zo)


def _reference(x, Vo, Xo, Yo, Zo):
    """Pure JAX per-axis nearest-upsample reference (matches F.interpolate 'nearest')."""
    B, Fin, V, X, Y, Z = x.shape
    out = jnp.take(x, jnp.asarray(_nearest_idx(Vo, V)), axis=2)
    out = jnp.take(out, jnp.asarray(_nearest_idx(Xo, X)), axis=3)
    out = jnp.take(out, jnp.asarray(_nearest_idx(Yo, Y)), axis=4)
    out = jnp.take(out, jnp.asarray(_nearest_idx(Zo, Z)), axis=5)
    return out


if __name__ == "__main__":
    key = jax.random.PRNGKey(0)
    B, Fin, V, X, Y, Z = 2, 4, 4, 4, 4, 4
    x = jax.random.normal(key, (B, Fin, V, X, Y, Z), dtype=jnp.float32)

    # dummy unpooling indices (unused by the module's forward, kept for API parity)
    indices_spa = jnp.zeros((B, Fin * V, X, Y, Z), dtype=jnp.int32)
    indices_sph = jnp.zeros((B, Fin, V), dtype=jnp.int32)

    out = mixed_pooling_avg_unpool(x, indices_spa, indices_sph)
    out = jax.block_until_ready(out)

    assert out.shape == (B, Fin, 4 * V, 2 * X, 2 * Y, 2 * Z), out.shape

    ref = _reference(x, 4 * V, 2 * X, 2 * Y, 2 * Z)
    np.testing.assert_allclose(np.asarray(out), np.asarray(ref),
                               rtol=1e-6, atol=1e-6)

    print("KERNEL_OK")
</pallas_src>

<mosaic_0001>
module attributes {stable_mosaic.version = 11 : i64} {
  func.func @_unpool_kernel_full(%arg0: i32, %arg1: memref<8x64xf32, #tpu.memory_space<vmem>>, %arg2: memref<64x512xf32, #tpu.memory_space<vmem>>, %arg3: memref<8x2048xf32, #tpu.memory_space<vmem>>) attributes {dimension_semantics = [#tpu.dimension_semantics<parallel>], iteration_bounds = array<i64: 4>, scalar_prefetch = 0 : i64, scratch_operands = 0 : i64, tpu.core_type = #tpu.core_type<tc>, window_params = [{transform_indices = @transform_0, window_bounds = array<i64: 8, 64>}, {pipeline_mode = #tpu.pipeline_mode<synchronous>, transform_indices = @transform_1, window_bounds = array<i64: 64, 512>}, {transform_indices = @transform_2, window_bounds = array<i64: 8, 2048>}]} {
    %c0 = arith.constant 0 : index
    %c0_0 = arith.constant 0 : index
    %0 = vector.load %arg1[%c0, %c0_0] : memref<8x64xf32, #tpu.memory_space<vmem>>, vector<8x64xf32>
    %c0_1 = arith.constant 0 : index
    %c0_2 = arith.constant 0 : index
    %1 = vector.load %arg2[%c0_1, %c0_2] : memref<64x512xf32, #tpu.memory_space<vmem>>, vector<64x512xf32>
    %cst = arith.constant dense<0.000000e+00> : vector<8x512xf32>
    %2 = tpu.matmul %0, %1, %cst {dimension_numbers = #tpu.dot_dimension_numbers<[1], [0], [0], [1], [0, 0, 1, 1], [], []>} : vector<8x64xf32>, vector<64x512xf32>, vector<8x512xf32> -> vector<8x512xf32>
    %c0_3 = arith.constant 0 : index
    %c0_4 = arith.constant 0 : index
    %3 = vector.load %arg3[%c0_3, %c0_4] : memref<8x2048xf32, #tpu.memory_space<vmem>>, vector<8x512xf32>
    tpu.vector_store %arg3[%c0_3, %c0_4], %2 {strides = array<i32>} : memref<8x2048xf32, #tpu.memory_space<vmem>>, vector<8x512xf32>,
    %c0_5 = arith.constant 0 : index
    %c512 = arith.constant 512 : index
    %4 = vector.load %arg3[%c0_5, %c512] : memref<8x2048xf32, #tpu.memory_space<vmem>>, vector<8x512xf32>
    tpu.vector_store %arg3[%c0_5, %c512], %2 {strides = array<i32>} : memref<8x2048xf32, #tpu.memory_space<vmem>>, vector<8x512xf32>,
    %c0_6 = arith.constant 0 : index
    %c1024 = arith.constant 1024 : index
    %5 = vector.load %arg3[%c0_6, %c1024] : memref<8x2048xf32, #tpu.memory_space<vmem>>, vector<8x512xf32>
    tpu.vector_store %arg3[%c0_6, %c1024], %2 {strides = array<i32>} : memref<8x2048xf32, #tpu.memory_space<vmem>>, vector<8x512xf32>,
    %c0_7 = arith.constant 0 : index
    %c1536 = arith.constant 1536 : index
    %6 = vector.load %arg3[%c0_7, %c1536] : memref<8x2048xf32, #tpu.memory_space<vmem>>, vector<8x512xf32>
    tpu.vector_store %arg3[%c0_7, %c1536], %2 {strides = array<i32>} : memref<8x2048xf32, #tpu.memory_space<vmem>>, vector<8x512xf32>,
    return
  }
  func.func @transform_0(%arg0: i32) -> (i32, i32) {
    %c0_i32 = arith.constant 0 : i32
    %c0_i32_0 = arith.constant 0 : i32
    return %arg0, %c0_i32 : i32, i32
  }
  func.func @transform_1(%arg0: i32) -> (i32, i32) {
    %c0_i32 = arith.constant 0 : i32
    %c0_i32_0 = arith.constant 0 : i32
    %c0_i32_1 = arith.constant 0 : i32
    return %c0_i32, %c0_i32_0 : i32, i32
  }
  func.func @transform_2(%arg0: i32) -> (i32, i32) {
    %c0_i32 = arith.constant 0 : i32
    %c0_i32_0 = arith.constant 0 : i32
    return %arg0, %c0_i32 : i32, i32
  }
}

</mosaic_0001>

<bundles_post_ra>
// kernel: tpu_custom_call.1
= control target key start
LH: loop header
LB: loop body
LE: loop exit
PB: predicated region body
PF: predicated region fallthrough
CT: control target
= control target key end

     0   :  { %7 = vsyncpa [#allocation3], 0  ;;  %s855_s0 = inlined_call_operand.hbm [shape: f32[32,64], index: 0, kind: input, shape index: {}]   ;;  %s856_s1 = inlined_call_operand.hbm [shape: f32[64,512], index: 1, kind: input, shape index: {}]   ;;  %s857_s2 = inlined_call_operand.hbm [shape: f32[32,2048], index: 2, kind: output, shape index: {}]  }
   0x1   :  { %9 = vsyncpa [#allocation3 + $0x1], 0 }
   0x2   :  { %10 = vsyncpa [#allocation6], 0 }
   0x3   :  { %11 = vsyncpa [#allocation4], 0 }
   0x4   :  { %13 = vsyncpa [#allocation4 + $0x1], 0  ;;  %s687_s9 = smov 0   ;;  %s689_s10 = smov 0  }
   0x5   :  { %s691_s11 = smov 0   ;;  %s693_s12 = smov 0  }
   0x6 LB: > { %s708_s13 = sadd.s32 4294967295, %s664_s12   ;;  %s464_s14 = sadd.s32 4294967294, %s664_s12   ;;  %s664_s12 = sphi %s693_s12, %s878_s12   ;;  %s660_s11 = sphi %s691_s11, %s877_s11   ;;  %s656_s10 = sphi %s689_s10, %s876_s10   ;;  %s652_s9 = sphi %s687_s9, %s875_s9  }
   0x7   : > { %p39_p0 = scmp.ne.s32.totalorder %s656_s10, %s652_s9  ;;  %p858_p1 = scmp.eq.s32.totalorder %s708_s13, 0 }
   0x8   : > { %p90_p3 = scmp.eq.s32.totalorder %s464_s14, 3  ;;  %p465_p5 = scmp.ge.s32.totalorder %s664_s12, 1 }
   0x9   : > { %p717_p4 = por %p858_p1, %p39_p0  ;;  %p97_p7 = scmp.lt.s32.totalorder %s664_s12, 5 }
   0xa   : > { %p722_p6 = por %p90_p3, %p39_p0  ;;  %s666_s18 = smov [#allocation5]  }
   0xb   : > { %s862_s15 = scalar_select %p717_p4, 1, 0 }
   0xc   : > { %s863_s16 = scalar_select %p722_p6, 1, 0 }
   0xd   : > { %p727_p8 = pnand %p465_p5, %p97_p7  ;;  %s109_s19 = sshll.u32 %s666_s18, 4  ;;  %s110_s19 = int_to_ptr.vmem [resolvable:$true] %s109_s19 }
   0xe   : > { %s740_s21 = sadd.s32 1, %s664_s12   ;;  %s26_s22 = sadd.s32 1, %s660_s11 }
   0xf   : > { %s864_s17 = scalar_select %p727_p8, 1, 0 }
  0x10   : > { %p490_p9 = pneg %p727_p8  ;;  %s23_s23 = ssub.s32 %s664_s12, %s740_s21 }
  0x11   : > { %s553_s24 = scalar_lea.vmem %s110_s19, 4096  ;;  %p561_p3 = scmp.lt.s32.totalorder %s110_s19, %s110_s19 }
  0x12   : > { %p735_p10 = pnand %p490_p9, %p858_p1  ;;  %p554_p12 = scmp.ne.s32.totalorder %s110_s19, %s553_s24 }
  0x13   : > { %p562_p5 = scmp.lt.s32.totalorder %s553_s24, %s553_s24 }
  0x14   : > { %p544_p11 = pneg %p735_p10 }
  0x15   : > { %p563_p7 = por %p562_p5, %p561_p3 }
  0x16   : > { %p556_p13 = pnand %p554_p12, %p544_p11 }
  0x18   : > { %p557_p0 = pneg %p556_p13 }
  0x1a   : > { %p564_p2 = pnand %p563_p7, %p557_p0 }
  0x1c   : > { %567 = shalt.err (!%p564_p2)
}
  0x1d   : > { %s667_s25 = smov 512   ;;  %s668_s26 = smov 32  }
  0x1e   : > { %493 = dma.hbm_to_vmem [thread:$0]  (!%p735_p10), %s856_s1, 4096, %s110_s19, [#allocation6], %s667_s25, %s667_s25, %s668_s26  }
  0x1f   : > { %p24_p9 = scmp.eq.s32.totalorder %s23_s23, 0  ;;  %p33_p11 = scmp.ne.s32.totalorder %s660_s11, %s656_s10 }
  0x20   : > { %p34_p12 = scmp.eq.s32.totalorder %s664_s12, 0  ;;  %p503_p2 = scmp.lt.s32.totalorder %s664_s12, 4 }
  0x21   : > { %s757_s29 = scalar_select %p24_p9, %s660_s11, %s26_s22  }
  0x22   : > { %p35_p13 = por %p34_p12, %p33_p11  ;;  %p866_p0 = scmp.eq.s32.totalorder %s708_s13, 3 }
  0x23   : > { %s123_s3 = sand.u32 1, %s660_s11   ;;  %s469_s4 = sshll.u32 %s664_s12, 7 }
  0x24   : > { %p761_p3 = por %p866_p0, %p33_p11  ;;  %s468_s5 = sshll.u32 %s123_s3, 3 }
  0x25   : > { %s770_s8 = scalar_lea.hbm %s855_s0, %s469_s4  ;;  %s127_s14 = scalar_lea.vmem [#allocation2], %s468_s5 }
  0x26   : > { %s867_s30 = scalar_select %p761_p3, 1, 0 }
  0x27   : > { %s134_s18 = sshll.u32 %s127_s14, 4  ;;  %p772_p10 = pnand %p503_p2, %p35_p13  ;;  %s135_s18 = int_to_ptr.vmem [resolvable:$true] %s134_s18 }
  0x28   : > { %s124_s20 = scalar_lea.sflag [#allocation3], %s123_s3  ;;  %s568_s22 = scalar_lea.hbm %s770_s8, 128 }
  0x29   : > { %p569_p5 = scmp.ne.s32.totalorder %s770_s8, %s568_s22  ;;  %p570_p7 = pneg %p772_p10 }
  0x2a   : > { %s573_s25 = scalar_lea.hbm %s855_s0, 512  ;;  %p574_p12 = scmp.lt.s32.totalorder %s770_s8, %s855_s0 }
  0x2b   : > { %p571_p9 = pnand %p570_p7, %p569_p5  ;;  %p575_p2 = scmp.lt.s32.totalorder %s573_s25, %s568_s22 }
  0x2d   : > { %p572_p11 = pneg %p571_p9  ;;  %p576_p13 = por %p575_p2, %p574_p12 }
  0x2f   : > { %p577_p0 = pnand %p576_p13, %p572_p11 }
  0x31   : > { %580 = shalt.err (!%p577_p0)
}
  0x32   : > { %s581_s28 = scalar_lea.vmem %s135_s18, 128  ;;  %s669_s3 = smov [#allocation2]  }
  0x33   : > { %p582_p1 = scmp.ne.s32.totalorder %s135_s18, %s581_s28  ;;  %s586_s4 = sshll.u32 %s669_s3, 4  ;;  %s587_s4 = int_to_ptr.vmem [resolvable:$false] %s586_s4 }
  0x34   : > { %s588_s5 = scalar_lea.vmem %s587_s4, 256  ;;  %p589_p5 = scmp.lt.s32.totalorder %s135_s18, %s587_s4 }
  0x35   : > { %p584_p6 = pnand %p582_p1, %p570_p7  ;;  %p590_p9 = scmp.lt.s32.totalorder %s588_s5, %s581_s28 }
  0x37   : > { %p585_p3 = pneg %p584_p6  ;;  %p591_p4 = por %p590_p9, %p589_p5 }
  0x39   : > { %p592_p8 = pnand %p591_p4, %p585_p3 }
  0x3b   : > { %595 = shalt.err (!%p592_p8)
}
  0x3c   : > { %497 = dma.hbm_to_vmem [thread:$0]  (!%p772_p10), %s770_s8, 128, %s135_s18, %s124_s20  }
  0x3d   : > { %p869_p11 = scmp.ne.s32.totalorder %s864_s17, 0 }
  0x3e   : > { %s793_s6 = sand.u32 (!%p869_p11), 1, %s656_s10   ;;  %p870_p1 = scmp.ne.s32.totalorder (!%p869_p11), %s862_s15, 0 }
  0x3f   : > { %143 = sbr.rel (%p869_p11) target bundleno = 303 (0x12f), region = 28  ;;  %s471_s7 = sshll.u32 (!%p869_p11), %s793_s6, 3 }
  0x40   : > { %s146_s14 = scalar_lea.sflag (!%p869_p11), [#allocation3], %s793_s6  ;;  %s797_s22 = scalar_lea.vmem (!%p869_p11), [#allocation2], %s471_s7 }
  0x44   : > { %639 = dma.done.wait (%p870_p1), %s146_s14, 128  }
  0x45   : > { %641 = vsyncadd (%p870_p1), %s146_s14, 4294967168  ;;  %p871_p4 = scmp.eq.s32.totalorder %s708_s13, 0 }
  0x47   : > { %643 = dma.done.wait (%p871_p4), [#allocation6], 4096   ;;  %p872_p6 = pmov %p871_p4 }
  0x48   : > { %v670_v0 = vmov 0.0   ;;  %v204_v1 = vld [vmem:[#allocation5 + $0xe8] sm:$0xff]  ;;  %v206_v2 = vld [vmem:[#allocation5 + $0xf8] sm:$0xff]  ;;  %v203_v3 = vld [vmem:[#allocation5 + $0xe0] sm:$0xff]  ;;  %vm207_vm0 = vcmask 523264   ;;  %s473_s15 = sshll.u32 %s793_s6, 7 }
  0x49   : > { %645 = vsyncadd (%p872_p6), [#allocation6], 4294963200  ;;  %275 = vmatprep.mubr.f32.mxu0 %v670_v0  ;;  %346 = vmatprep.mubr.f32.mxu1 %v670_v0  ;;  %v205_v4 = vld [vmem:[#allocation5 + $0xf0] sm:$0xff]  ;;  %v200_v5 = vld [vmem:[#allocation5 + $0xc8] sm:$0xff]  ;;  %s481_s17 = sshll.u32 %s708_s13, 11  ;;  %s173_s8 = scalar_lea.vmem [#allocation7], %s473_s15 }
  0x4a   : > { %227 = vmatprep.subr.mxu0 %v204_v1  ;;  %298 = vmatprep.subr.mxu1 %v206_v2  ;;  %v202_v6 = vld [vmem:[#allocation5 + $0xd8] sm:$0xff]  ;;  %v199_v7 = vld [vmem:[#allocation5 + $0xc0] sm:$0xff]  ;;  %v201_v8 = vld [vmem:[#allocation5 + $0xd0] sm:$0xff]  ;;  %s384_s18 = sshll.u32 %s173_s8, 4  ;;  %s813_s23 = scalar_lea.hbm %s857_s2, %s481_s17  ;;  %s815_s18 = int_to_ptr.vmem [resolvable:$true] %s384_s18 }
  0x4b   : > { %228 = vmatpush1.msra.mxu0 %v203_v3  ;;  %299 = vmatpush1.msra.mxu1 %v205_v4  ;;  %v196_v9 = vld [vmem:[#allocation5 + $0xa8] sm:$0xff]  ;;  %v198_v10 = vld [vmem:[#allocation5 + $0xb8] sm:$0xff]  ;;  %v195_v11 = vld [vmem:[#allocation5 + $0xa0] sm:$0xff]  ;;  %s370_s13 = scalar_lea.sflag [#allocation4], %s793_s6  ;;  %s596_s24 = scalar_lea.vmem %s815_s18, 2048 }
  0x4c   : > { %229 = vmatprep.subr.mxu0 %v200_v5  ;;  %300 = vmatprep.subr.mxu1 %v202_v6  ;;  %v197_v12 = vld [vmem:[#allocation5 + $0xb0] sm:$0xff]  ;;  %v192_v13 = vld [vmem:[#allocation5 + $0x88] sm:$0xff]  ;;  %v194_v14 = vld [vmem:[#allocation5 + $0x98] sm:$0xff]  ;;  %p597_p8 = scmp.ne.s32.totalorder %s815_s18, %s596_s24  ;;  %p873_p3 = scmp.ne.s32.totalorder %s867_s30, 0 }
  0x4d   : > { %230 = vmatpush1.msra.mxu0 %v199_v7  ;;  %301 = vmatpush1.msra.mxu1 %v201_v8  ;;  %v191_v15 = vld [vmem:[#allocation5 + $0x80] sm:$0xff]  ;;  %v193_v16 = vld [vmem:[#allocation5 + $0x90] sm:$0xff]  ;;  %v188_v17 = vld [vmem:[#allocation5 + $0x68] sm:$0xff]  ;;  %s671_s25 = smov [#allocation7]  }
  0x4e   : > { %231 = vmatprep.subr.mxu0 %v196_v9  ;;  %302 = vmatprep.subr.mxu1 %v198_v10  ;;  %v190_v18 = vld [vmem:[#allocation5 + $0x78] sm:$0xff]  ;;  %v187_v19 = vld [vmem:[#allocation5 + $0x60] sm:$0xff]  ;;  %v189_v20 = vld [vmem:[#allocation5 + $0x70] sm:$0xff]  ;;  %p598_p10 = pnand %p597_p8, %p873_p3  ;;  %s600_s26 = sshll.u32 %s671_s25, 4  ;;  %s601_s26 = int_to_ptr.vmem [resolvable:$false] %s600_s26 }
  0x4f   : > { %232 = vmatpush1.msra.mxu0 %v195_v11  ;;  %303 = vmatpush1.msra.mxu1 %v197_v12  ;;  %v184_v21 = vld [vmem:[#allocation5 + $0x48] sm:$0xff]  ;;  %v186_v22 = vld [vmem:[#allocation5 + $0x58] sm:$0xff]  ;;  %v183_v23 = vld [vmem:[#allocation5 + $0x40] sm:$0xff]  ;;  %s602_s27 = scalar_lea.vmem %s601_s26, 4096  ;;  %p603_p12 = scmp.lt.s32.totalorder %s815_s18, %s601_s26 }
  0x50   : > { %233 = vmatprep.subr.mxu0 %v192_v13  ;;  %304 = vmatprep.subr.mxu1 %v194_v14  ;;  %v185_v24 = vld [vmem:[#allocation5 + $0x50] sm:$0xff]  ;;  %v180_v25 = vld [vmem:[#allocation5 + $0x28] sm:$0xff]  ;;  %v182_v26 = vld [vmem:[#allocation5 + $0x38] sm:$0xff]  ;;  %p599_p7 = pneg %p598_p10  ;;  %p604_p2 = scmp.lt.s32.totalorder %s602_s27, %s596_s24 }
  0x51   : > { %234 = vmatpush1.msra.mxu0 %v191_v15  ;;  %305 = vmatpush1.msra.mxu1 %v193_v16  ;;  %v179_v27 = vld [vmem:[#allocation5 + $0x20] sm:$0xff]  ;;  %v181_v28 = vld [vmem:[#allocation5 + $0x30] sm:$0xff]  ;;  %v176_v29 = vld [vmem:[#allocation5 + $0x8] sm:$0xff] }
  0x52   : > { %235 = vmatprep.subr.mxu0 %v188_v17  ;;  %306 = vmatprep.subr.mxu1 %v190_v18  ;;  %v178_v30 = vld [vmem:[#allocation5 + $0x18] sm:$0xff]  ;;  %v175_v31 = vld [vmem:[#allocation5] sm:$0xff]  ;;  %v177_v32 = vld [vmem:[#allocation5 + $0x10] sm:$0xff]  ;;  %p605_p13 = por %p604_p2, %p603_p12 }
  0x53   : > { %236 = vmatpush1.msra.mxu0 %v187_v19  ;;  %307 = vmatpush1.msra.mxu1 %v189_v20  ;;  %v174_v33 = vld [vmem:[%s797_s22] sm:$0xff] }
  0x54   : > { %237 = vmatprep.subr.mxu0 %v184_v21  ;;  %308 = vmatprep.subr.mxu1 %v186_v22  ;;  %p606_p0 = pnand %p605_p13, %p599_p7 }
  0x55   : > { %238 = vmatpush1.msra.mxu0 %v183_v23  ;;  %309 = vmatpush1.msra.mxu1 %v185_v24 }
  0x56   : > { %239 = vmatprep.subr.mxu0 %v180_v25  ;;  %310 = vmatprep.subr.mxu1 %v182_v26 }
  0x57   : > { %240 = vmatpush1.msra.mxu0 %v179_v27  ;;  %311 = vmatpush1.msra.mxu1 %v181_v28 }
  0x58   : > { %241 = vmatprep.subr.mxu0 %v176_v29  ;;  %312 = vmatprep.subr.mxu1 %v178_v30 }
  0x59   : > { %242 = vmatpush1.msra.mxu0 %v175_v31  ;;  %313 = vmatpush1.msra.mxu1 %v177_v32 }
  0x5a   : > { %474 = vmatmul.mubr.msk.f32.vlgmr.msra.gmra.mxu0 %vm207_vm0, %v174_v33  ;;  %475 = vmatmul.mubr.msk.f32.vlgmr.msra.gmra.mxu1 %vm207_vm0, %v174_v33 }
 0x11a   : > { %v277_v34 = vpop.f32.mrf.mxu0  ;;  %v348_v35 = vpop.f32.mrf.mxu1 }
 0x11b   : > { %353 = vst [vmem:[%s173_s8] sm:$0xff] %v277_v34  ;;  %357 = vst [vmem:[%s173_s8 + $0x20] sm:$0xff] %v277_v34 }
 0x11c   : > { %361 = vst [vmem:[%s173_s8 + $0x40] sm:$0xff] %v277_v34  ;;  %365 = vst [vmem:[%s173_s8 + $0x60] sm:$0xff] %v277_v34  ;;  %v279_v36 = vpop.f32.mrf.mxu0  ;;  %v350_v37 = vpop.f32.mrf.mxu1 }
 0x11d   : > { %355 = vst [vmem:[%s173_s8 + $0x10] sm:$0xff] %v348_v35  ;;  %359 = vst [vmem:[%s173_s8 + $0x30] sm:$0xff] %v348_v35 }
 0x11e   : > { %363 = vst [vmem:[%s173_s8 + $0x50] sm:$0xff] %v348_v35  ;;  %367 = vst [vmem:[%s173_s8 + $0x70] sm:$0xff] %v348_v35 }
 0x11f   : > { %354 = vst [vmem:[%s173_s8 + $0x8] sm:$0xff] %v279_v36  ;;  %358 = vst [vmem:[%s173_s8 + $0x28] sm:$0xff] %v279_v36 }
 0x120   : > { %362 = vst [vmem:[%s173_s8 + $0x48] sm:$0xff] %v279_v36  ;;  %366 = vst [vmem:[%s173_s8 + $0x68] sm:$0xff] %v279_v36 }
 0x121   : > { %356 = vst [vmem:[%s173_s8 + $0x18] sm:$0xff] %v350_v37  ;;  %360 = vst [vmem:[%s173_s8 + $0x38] sm:$0xff] %v350_v37 }
 0x122   : > { %364 = vst [vmem:[%s173_s8 + $0x58] sm:$0xff] %v350_v37  ;;  %368 = vst [vmem:[%s173_s8 + $0x78] sm:$0xff] %v350_v37 }
 0x123   : > { %609 = shalt.err (!%p606_p0)
}
 0x124   : > { %s610_s28 = scalar_lea.hbm %s813_s23, 2048  ;;  %s614_s5 = scalar_lea.hbm %s857_s2, 8192 }
 0x125   : > { %p611_p5 = scmp.ne.s32.totalorder %s813_s23, %s610_s28  ;;  %p615_p1 = scmp.lt.s32.totalorder %s813_s23, %s857_s2 }
 0x126   : > { %p616_p4 = scmp.lt.s32.totalorder %s614_s5, %s610_s28 }
 0x127   : > { %p612_p9 = pnand %p611_p5, %p873_p3 }
 0x128   : > { %p617_p6 = por %p616_p4, %p615_p1 }
 0x129   : > { %p613_p11 = pneg %p612_p9 }
 0x12b   : > { %p618_p8 = pnand %p617_p6, %p613_p11 }
 0x12d   : > { %621 = shalt.err (!%p618_p8)
}
 0x12e   : > { %488 = dma.vmem_to_hbm [thread:$0]  (%p873_p3), %s815_s18, 2048, %s813_s23, %s370_s13  }
 0x12f PF: > { %p505_p10 = scmp.ge.s32.totalorder %s664_s12, 2  ;;  %s396_s14 = sand.u32 1, %s652_s9  }
 0x130   : > { %p874_p7 = scmp.ne.s32.totalorder %s863_s16, 0  ;;  %s397_s22 = scalar_lea.sflag [#allocation4], %s396_s14 }
 0x132   : > { %p499_p12 = pnand %p505_p10, %p874_p7 }
 0x134   : > { %p500_p2 = pneg %p499_p12 }
 0x136   : > { %647 = dma.done.wait (%p500_p2), %s397_s22, 2048  }
 0x137   : > { %649 = vsyncadd (%p500_p2), %s397_s22, 4294965248  ;;  %p16_p13 = scmp.ge.s32.totalorder %s740_s21, 6   ;;  %s875_s9 = smov %s656_s10 }
 0x138   : > { %s876_s10 = smov %s660_s11  ;;  %s877_s11 = smov %s757_s29 }
 0x139   : > { %s878_s12 = smov %s740_s21  ;;  %18 = sbr.rel (!%p16_p13) target bundleno = 6 (0x6), region = 77 }
 0x13e   :  { %402 = vsyncpa [#allocation3], 1 }
 0x13f   :  { %404 = vsyncpa [#allocation3 + $0x1], 1 }
 0x140   :  { %405 = vsyncpa [#allocation6], 1 }
 0x141   :  { %406 = vsyncpa [#allocation4], 1 }
 0x142   :  { %408 = vsyncpa [#allocation4 + $0x1], 1 }

</bundles_post_ra>
